<compile_context>
chip_gen: v5e
topology: v5e:2x2
jax: 0.10.0
libtpu: 0.0.40
codegen_flags: <defaults>
</compile_context>

<pallas_src>
import functools
import math
from typing import NamedTuple

import jax
import jax.numpy as jnp
from jax.experimental import pallas as pl
from jax.experimental.pallas import tpu as pltpu

_LANE = 128
_SUBLANE = 16  # row tiles kept multiples of 16 so bf16 sublane packing is legal


def _round_up(x, m):
    return ((x + m - 1) // m) * m


# -----------------------------------------------------------------------------
# Hardware-aware VMEM budget
# -----------------------------------------------------------------------------
def _vmem_caps():
    """Returns (compiler scoped vmem limit, tile-sizing budget) in bytes."""
    try:
        cap = int(pltpu.get_tpu_info().vmem_capacity_bytes)
    except Exception:
        cap = 64 * 1024 * 1024  # conservative (v7x-sized) fallback
    limit = max(32 * 1024 * 1024, cap - 16 * 1024 * 1024)
    budget = (limit * 7) // 8  # headroom for Mosaic internal scratch
    return limit, budget


# -----------------------------------------------------------------------------
# One-time capability probe: pipeline_mode=pl.Buffered(1) on a constant-index
# input spec (single-buffered, grid-invariant operand).
# -----------------------------------------------------------------------------
_SINGLE_BUFFER_OK = None


def _copy_probe_kernel(x_ref, o_ref):
    o_ref[...] = x_ref[...]


def _single_buffer_supported():
    global _SINGLE_BUFFER_OK
    if _SINGLE_BUFFER_OK is not None:
        return _SINGLE_BUFFER_OK
    try:
        x = jnp.zeros((8, 128), jnp.float32)
        y = pl.pallas_call(
            _copy_probe_kernel,
            out_shape=jax.ShapeDtypeStruct((16, 128), jnp.float32),
            grid=(2,),
            in_specs=[pl.BlockSpec((8, 128), lambda i: (0, 0),
                                   pipeline_mode=pl.Buffered(1))],
            out_specs=pl.BlockSpec((8, 128), lambda i: (i, 0)),
        )(x)
        jax.block_until_ready(y)
        _SINGLE_BUFFER_OK = True
    except Exception:
        _SINGLE_BUFFER_OK = False
    return _SINGLE_BUFFER_OK


# -----------------------------------------------------------------------------
# GELU in f32
# -----------------------------------------------------------------------------
def _gelu_f32(h, approximate):
    if approximate:
        # tanh form -> EUP slot (free-ish under MXU-bound matmuls).
        c = jnp.float32(math.sqrt(2.0 / math.pi))
        return 0.5 * h * (1.0 + jnp.tanh(c * (h + jnp.float32(0.044715) * h * h * h)))
    # exact erf -> matches torch.nn.GELU() default
    inv_sqrt2 = jnp.float32(1.0 / math.sqrt(2.0))
    return 0.5 * h * (1.0 + jax.lax.erf(h * inv_sqrt2))


# -----------------------------------------------------------------------------
# Kernels
# -----------------------------------------------------------------------------
def _projection_kernel(x_ref, w1_ref, b1_ref, w2_ref, b2_ref, o_ref, *, approximate):
    """fc2(gelu(fc1(x))) for one row tile; weights fully resident; f32 accum."""
    x = x_ref[...].astype(w1_ref.dtype)               # in-kernel cast (VPU, hidden)
    h = jnp.dot(x, w1_ref[...], preferred_element_type=jnp.float32)
    h = _gelu_f32(h + b1_ref[...], approximate)
    h = h.astype(w2_ref.dtype)
    o = jnp.dot(h, w2_ref[...], preferred_element_type=jnp.float32) + b2_ref[...]
    o_ref[...] = o.astype(o_ref.dtype)


def _projection_kernel_ktiled(x_ref, w1_ref, b1_ref, w2_ref, b2_ref, o_ref,
                              acc_ref, *, approximate):
    """Hidden dim streamed in k-tiles (reduction grid axis); f32 accumulator."""
    k = pl.program_id(1)

    @pl.when(k == 0)
    def _():
        acc_ref[...] = jnp.zeros_like(acc_ref)

    x = x_ref[...].astype(w1_ref.dtype)
    h = jnp.dot(x, w1_ref[...], preferred_element_type=jnp.float32)
    h = _gelu_f32(h + b1_ref[...], approximate)
    h = h.astype(w2_ref.dtype)
    acc_ref[...] += jnp.dot(h, w2_ref[...], preferred_element_type=jnp.float32)

    @pl.when(k == pl.num_programs(1) - 1)
    def _():
        o_ref[...] = (acc_ref[...] + b2_ref[...]).astype(o_ref.dtype)


# -----------------------------------------------------------------------------
# Prepare-once parameter packing (hoisted out of the per-call hot path)
# -----------------------------------------------------------------------------
class ProjectionParams(NamedTuple):
    w1: jax.Array          # (in_features, out_p)   compute dtype
    b1: jax.Array          # (1, out_p)             f32
    w2: jax.Array          # (out_p, out_p)         compute dtype
    b2: jax.Array          # (1, out_p)             f32
    out_features: int      # un-padded output width


def prepare_projection_params(w1, b1, w2, b2, *, compute_dtype=None):
    """Pad the hidden/output dim to a lane multiple and cast to the MXU dtype.

    w1: (in_features, out_features) -- nn.Linear weight pre-transposed.
    compute_dtype: MXU input dtype; jnp.bfloat16 recommended on v6e/v7x.
    """
    in_f, out_f = w1.shape
    out_p = _round_up(out_f, _LANE)
    cd = jnp.dtype(compute_dtype) if compute_dtype is not None else jnp.dtype(w1.dtype)
    if out_p != out_f:
        pad = out_p - out_f
        w1 = jnp.pad(w1, ((0, 0), (0, pad)))
        w2 = jnp.pad(w2, ((0, pad), (0, pad)))
        b1 = jnp.pad(b1, (0, pad))
        b2 = jnp.pad(b2, (0, pad))
    return ProjectionParams(
        w1=w1.astype(cd),
        b1=b1.astype(jnp.float32).reshape(1, out_p),
        w2=w2.astype(cd),
        b2=b2.astype(jnp.float32).reshape(1, out_p),
        out_features=out_f,
    )


# -----------------------------------------------------------------------------
# VMEM estimates & tile picking
# -----------------------------------------------------------------------------
def _vmem_est_resident(t, in_f, out_p, x_b, cd_b, o_b, weight_bufs):
    x_tiles = 2 * t * in_f * x_b                               # double-buffered x tile
    o_tiles = 2 * t * out_p * o_b                              # double-buffered out tile
    w_bufs = weight_bufs * (in_f * out_p + out_p * out_p) * cd_b
    b_bufs = weight_bufs * 2 * out_p * 4
    tmp = t * out_p * (8 + cd_b) + t * in_f * cd_b             # h(f32)+o(f32)+h(cast)+x(cast)
    return x_tiles + o_tiles + w_bufs + b_bufs + tmp


def _vmem_est_ktiled(t, tk, in_f, out_p, x_b, cd_b, o_b, weight_bufs):
    x_tiles = 2 * t * in_f * x_b
    o_tiles = 2 * t * out_p * o_b
    w_tiles = 2 * (in_f * tk + tk * out_p) * cd_b              # streamed, double-buffered
    b_tiles = 2 * tk * 4 + weight_bufs * out_p * 4
    acc = t * out_p * 4
    tmp = t * tk * (4 + cd_b) + t * out_p * 4 + t * in_f * cd_b
    return x_tiles + o_tiles + w_tiles + b_tiles + acc + tmp


def _pick_dividing_tile(total, desired, unit=_LANE):
    """Largest multiple of `unit` that divides `total` and is <= desired."""
    q = total // unit
    d = max(1, min(q, max(1, desired // unit)))
    while q % d != 0:
        d -= 1
    return d * unit


# -----------------------------------------------------------------------------
# Public entry point
# -----------------------------------------------------------------------------
def projection_layer(x, params, *, tm=None, hidden_block=None, approximate_gelu=False):
    """Fused ProjectionLayer forward: fc2(gelu(fc1(x))).

    x:      (..., in_features); cast to the MXU compute dtype inside the kernel.
    params: ProjectionParams from prepare_projection_params().
    tm:     row (token) tile, default 512 (auto-shrunk to fit the VMEM budget).
    hidden_block: force streaming the padded hidden dim in tiles of this width
        (multiple of 128).  Default: only used when resident weights don't fit.
    approximate_gelu: use tanh-GELU (EUP) instead of exact erf (VALU).
    """
    in_f = x.shape[-1]
    out_f = params.out_features
    out_p = params.w1.shape[1]
    lead_shape = x.shape[:-1]
    out_dtype = x.dtype

    x2d = x.reshape(-1, in_f)
    M = x2d.shape[0]

    x_b = jnp.dtype(x.dtype).itemsize
    cd_b = jnp.dtype(params.w1.dtype).itemsize
    o_b = jnp.dtype(out_dtype).itemsize

    vmem_limit, budget = _vmem_caps()
    single_buf = _single_buffer_supported()
    weight_bufs = 1 if single_buf else 2

    # --- row tile ------------------------------------------------------------
    tm = 512 if tm is None else int(tm)
    tm = max(_SUBLANE, (tm // _SUBLANE) * _SUBLANE)
    tm_eff = min(tm, _round_up(M, _SUBLANE))
    # v7x has 2 TensorCores: give the parallel row axis >= 2 steps when there
    # is enough work (cheap ~0.35us/step on single-TC v5e/v6e).
    if M >= 2 * _SUBLANE and pl.cdiv(M, tm_eff) < 2:
        tm_eff = min(tm_eff, _round_up(pl.cdiv(M, 2), _SUBLANE))

    # --- resident-weights vs. hidden-streaming path ---------------------------
    use_ktiled = hidden_block is not None
    tk = None
    if not use_ktiled:
        while (tm_eff > 64 and
               _vmem_est_resident(tm_eff, in_f, out_p, x_b, cd_b, o_b, weight_bufs) > budget):
            tm_eff = max(_SUBLANE, ((tm_eff // 2) // _SUBLANE) * _SUBLANE)
        if _vmem_est_resident(tm_eff, in_f, out_p, x_b, cd_b, o_b, weight_bufs) > budget:
            use_ktiled = True  # weights + f32 intermediate too large to keep resident
    if use_ktiled:
        desired = int(hidden_block) if hidden_block is not None else 512
        tk = _pick_dividing_tile(out_p, max(_LANE, desired))
        while (tk > _LANE and
               _vmem_est_ktiled(tm_eff, tk, in_f, out_p, x_b, cd_b, o_b, weight_bufs) > budget):
            tk = _pick_dividing_tile(out_p, tk // 2)
        while (tm_eff > 64 and
               _vmem_est_ktiled(tm_eff, tk, in_f, out_p, x_b, cd_b, o_b, weight_bufs) > budget):
            tm_eff = max(_SUBLANE, ((tm_eff // 2) // _SUBLANE) * _SUBLANE)

    const_kwargs = {"pipeline_mode": pl.Buffered(1)} if single_buf else {}

    flops = 2 * M * in_f * out_p + 2 * M * out_p * out_p
    bytes_accessed = (M * in_f * x_b + M * out_p * o_b
                      + (in_f * out_p + out_p * out_p) * cd_b + 2 * out_p * 4)
    cost = pl.CostEstimate(flops=int(flops), transcendentals=int(M * out_p),
                           bytes_accessed=int(bytes_accessed))

    if not use_ktiled:
        grid_spec = pltpu.PrefetchScalarGridSpec(
            num_scalar_prefetch=0,
            grid=(pl.cdiv(M, tm_eff),),
            in_specs=[
                pl.BlockSpec((tm_eff, in_f), lambda i: (i, 0)),                   # x
                pl.BlockSpec((in_f, out_p), lambda i: (0, 0), **const_kwargs),    # W1
                pl.BlockSpec((1, out_p), lambda i: (0, 0), **const_kwargs),       # b1
                pl.BlockSpec((out_p, out_p), lambda i: (0, 0), **const_kwargs),   # W2
                pl.BlockSpec((1, out_p), lambda i: (0, 0), **const_kwargs),       # b2
            ],
            out_specs=pl.BlockSpec((tm_eff, out_p), lambda i: (i, 0)),
        )
        kernel = functools.partial(_projection_kernel, approximate=approximate_gelu)
        semantics = ("parallel",)
    else:
        grid_spec = pltpu.PrefetchScalarGridSpec(
            num_scalar_prefetch=0,
            grid=(pl.cdiv(M, tm_eff), out_p // tk),
            in_specs=[
                pl.BlockSpec((tm_eff, in_f), lambda i, k: (i, 0)),                # x (k-invariant)
                pl.BlockSpec((in_f, tk), lambda i, k: (0, k)),                    # W1 k-tile
                pl.BlockSpec((1, tk), lambda i, k: (0, k)),                       # b1 k-tile
                pl.BlockSpec((tk, out_p), lambda i, k: (k, 0)),                   # W2 k-tile
                pl.BlockSpec((1, out_p), lambda i, k: (0, 0), **const_kwargs),    # b2
            ],
            out_specs=pl.BlockSpec((tm_eff, out_p), lambda i, k: (i, 0)),
            scratch_shapes=[pltpu.VMEM((tm_eff, out_p), jnp.float32)],
        )
        kernel = functools.partial(_projection_kernel_ktiled, approximate=approximate_gelu)
        semantics = ("parallel", "arbitrary")

    out = pl.pallas_call(
        kernel,
        out_shape=jax.ShapeDtypeStruct((M, out_p), out_dtype),
        grid_spec=grid_spec,
        compiler_params=pltpu.CompilerParams(
            dimension_semantics=semantics,
            vmem_limit_bytes=int(vmem_limit),
        ),
        cost_estimate=cost,
    )(x2d, params.w1, params.b1, params.w2, params.b2)

    if out_p != out_f:
        # TODO(synk): expose a return_padded option so a downstream consumer can
        # fuse this slice away instead of paying an extra HBM pass.
        out = out[:, :out_f]
    return out.reshape(*lead_shape, out_f)


# -----------------------------------------------------------------------------
# Reference + self-test
# -----------------------------------------------------------------------------
def _reference(x, w1, b1, w2, b2):
    h = x @ w1 + b1
    h = 0.5 * h * (1.0 + jax.lax.erf(h / jnp.float32(math.sqrt(2.0))))
    return h @ w2 + b2


if __name__ == "__main__":
    key = jax.random.PRNGKey(0)
    batch, seq = 2, 8
    in_features, out_features = 32, 64

    k_x, k_w1, k_b1, k_w2, k_b2 = jax.random.split(key, 5)
    x = jax.random.normal(k_x, (batch, seq, in_features), dtype=jnp.float32)

    # nn.Linear stores weight as (out, in); we keep it pre-transposed (in, out).
    bound1 = 1.0 / math.sqrt(in_features)
    w1 = jax.random.uniform(k_w1, (in_features, out_features),
                            minval=-bound1, maxval=bound1, dtype=jnp.float32)
    b1 = jax.random.uniform(k_b1, (out_features,),
                            minval=-bound1, maxval=bound1, dtype=jnp.float32)
    bound2 = 1.0 / math.sqrt(out_features)
    w2 = jax.random.uniform(k_w2, (out_features, out_features),
                            minval=-bound2, maxval=bound2, dtype=jnp.float32)
    b2 = jax.random.uniform(k_b2, (out_features,),
                            minval=-bound2, maxval=bound2, dtype=jnp.float32)

    y_ref = _reference(x, w1, b1, w2, b2)

    # f32 path, exact erf-GELU (matches torch defaults), resident weights.
    params_f32 = prepare_projection_params(w1, b1, w2, b2)
    y = jax.block_until_ready(projection_layer(x, params_f32))
    assert y.shape == (batch, seq, out_features)
    assert jnp.allclose(y, y_ref, atol=1e-5, rtol=1e-5), "f32 path mismatch"

    # tanh-GELU (EUP) variant -- looser tolerance vs the erf reference.
    y_tanh = jax.block_until_ready(projection_layer(x, params_f32, approximate_gelu=True))
    assert jnp.allclose(y_tanh, y_ref, atol=5e-2, rtol=5e-2), "tanh-GELU mismatch"

    # bf16 MXU fast path (recommended compute dtype on v6e/v7x), f32 accumulation.
    params_bf16 = prepare_projection_params(w1, b1, w2, b2, compute_dtype=jnp.bfloat16)
    y_bf16 = jax.block_until_ready(projection_layer(x, params_bf16))
    assert jnp.allclose(y_bf16, y_ref, atol=1e-1, rtol=1e-1), "bf16 path mismatch"

    # Hidden-dim streaming (reduction grid axis) path, with 2 k-steps.
    out_features2 = 256
    k_w1b, k_b1b, k_w2b, k_b2b = jax.random.split(jax.random.PRNGKey(1), 4)
    bound1b = 1.0 / math.sqrt(in_features)
    w1b = jax.random.uniform(k_w1b, (in_features, out_features2),
                             minval=-bound1b, maxval=bound1b, dtype=jnp.float32)
    b1b = jax.random.uniform(k_b1b, (out_features2,),
                             minval=-bound1b, maxval=bound1b, dtype=jnp.float32)
    bound2b = 1.0 / math.sqrt(out_features2)
    w2b = jax.random.uniform(k_w2b, (out_features2, out_features2),
                             minval=-bound2b, maxval=bound2b, dtype=jnp.float32)
    b2b = jax.random.uniform(k_b2b, (out_features2,),
                             minval=-bound2b, maxval=bound2b, dtype=jnp.float32)
    y_ref2 = _reference(x, w1b, b1b, w2b, b2b)
    params2 = prepare_projection_params(w1b, b1b, w2b, b2b)
    y2 = jax.block_until_ready(projection_layer(x, params2, hidden_block=128))
    assert y2.shape == (batch, seq, out_features2)
    assert jnp.allclose(y2, y_ref2, atol=1e-4, rtol=1e-4), "k-tiled path mismatch"

    print("KERNEL_OK")
</pallas_src>

<mosaic_0001>
module attributes {stable_mosaic.version = 11 : i64} {
  func.func @_copy_probe_kernel(%arg0: i32, %arg1: memref<8x128xf32, #tpu.memory_space<vmem>>, %arg2: memref<8x128xf32, #tpu.memory_space<vmem>>) attributes {dimension_semantics = [#tpu.dimension_semantics<arbitrary>], iteration_bounds = array<i64: 2>, scalar_prefetch = 0 : i64, scratch_operands = 0 : i64, tpu.core_type = #tpu.core_type<tc>, window_params = [{pipeline_mode = #tpu.pipeline_mode<synchronous>, transform_indices = @transform_0, window_bounds = array<i64: 8, 128>}, {transform_indices = @transform_1, window_bounds = array<i64: 8, 128>}]} {
    %c0 = arith.constant 0 : index
    %c0_0 = arith.constant 0 : index
    %0 = vector.load %arg1[%c0, %c0_0] : memref<8x128xf32, #tpu.memory_space<vmem>>, vector<8x128xf32>
    %c0_1 = arith.constant 0 : index
    %c0_2 = arith.constant 0 : index
    %1 = vector.load %arg2[%c0_1, %c0_2] : memref<8x128xf32, #tpu.memory_space<vmem>>, vector<8x128xf32>
    tpu.vector_store %arg2[%c0_1, %c0_2], %0 {strides = array<i32>} : memref<8x128xf32, #tpu.memory_space<vmem>>, vector<8x128xf32>,
    return
  }
  func.func @transform_0(%arg0: i32) -> (i32, i32) {
    %c0_i32 = arith.constant 0 : i32
    %c0_i32_0 = arith.constant 0 : i32
    %c0_i32_1 = arith.constant 0 : i32
    return %c0_i32, %c0_i32_0 : i32, i32
  }
  func.func @transform_1(%arg0: i32) -> (i32, i32) {
    %c0_i32 = arith.constant 0 : i32
    %c0_i32_0 = arith.constant 0 : i32
    return %arg0, %c0_i32 : i32, i32
  }
}

module attributes {stable_mosaic.version = 11 : i64} {
  func.func @_projection_kernel(%arg0: i32, %arg1: memref<16x32xf32, #tpu.memory_space<vmem>>, %arg2: memref<32x128xf32, #tpu.memory_space<vmem>>, %arg3: memref<1x128xf32, #tpu.memory_space<vmem>>, %arg4: memref<128x128xf32, #tpu.memory_space<vmem>>, %arg5: memref<1x128xf32, #tpu.memory_space<vmem>>, %arg6: memref<16x128xf32, #tpu.memory_space<vmem>>) attributes {dimension_semantics = [#tpu.dimension_semantics<parallel>], iteration_bounds = array<i64: 1>, scalar_prefetch = 0 : i64, scratch_operands = 0 : i64, tpu.core_type = #tpu.core_type<tc>, window_params = [{transform_indices = @transform_0, window_bounds = array<i64: 16, 32>}, {pipeline_mode = #tpu.pipeline_mode<synchronous>, transform_indices = @transform_1, window_bounds = array<i64: 32, 128>}, {pipeline_mode = #tpu.pipeline_mode<synchronous>, transform_indices = @transform_2, window_bounds = array<i64: 1, 128>}, {pipeline_mode = #tpu.pipeline_mode<synchronous>, transform_indices = @transform_3, window_bounds = array<i64: 128, 128>}, {pipeline_mode = #tpu.pipeline_mode<synchronous>, transform_indices = @transform_4, window_bounds = array<i64: 1, 128>}, {transform_indices = @transform_5, window_bounds = array<i64: 16, 128>}]} {
    %c0 = arith.constant 0 : index
    %c0_0 = arith.constant 0 : index
    %0 = vector.load %arg1[%c0, %c0_0] : memref<16x32xf32, #tpu.memory_space<vmem>>, vector<16x32xf32>
    %c0_1 = arith.constant 0 : index
    %c0_2 = arith.constant 0 : index
    %1 = vector.load %arg2[%c0_1, %c0_2] : memref<32x128xf32, #tpu.memory_space<vmem>>, vector<32x128xf32>
    %cst = arith.constant dense<0.000000e+00> : vector<16x128xf32>
    %2 = tpu.matmul %0, %1, %cst {dimension_numbers = #tpu.dot_dimension_numbers<[1], [0], [0], [1], [0, 0, 1, 1], [], []>} : vector<16x32xf32>, vector<32x128xf32>, vector<16x128xf32> -> vector<16x128xf32>
    %c0_3 = arith.constant 0 : index
    %c0_4 = arith.constant 0 : index
    %3 = vector.load %arg3[%c0_3, %c0_4] : memref<1x128xf32, #tpu.memory_space<vmem>>, vector<1x128xf32>
    %4 = vector.broadcast %3 : vector<1x128xf32> to vector<16x128xf32>
    %5 = arith.addf %2, %4 : vector<16x128xf32>
    %cst_5 = arith.constant 5.000000e-01 : f32
    %6 = vector.broadcast %cst_5 : f32 to vector<16x128xf32>
    %7 = arith.mulf %6, %5 : vector<16x128xf32>
    %cst_6 = arith.constant 0.707106769 : f32
    %8 = vector.broadcast %cst_6 : f32 to vector<16x128xf32>
    %9 = arith.mulf %5, %8 : vector<16x128xf32>
    %10 = math.erf %9 : vector<16x128xf32>
    %cst_7 = arith.constant 1.000000e+00 : f32
    %11 = vector.broadcast %cst_7 : f32 to vector<16x128xf32>
    %12 = arith.addf %11, %10 : vector<16x128xf32>
    %13 = arith.mulf %7, %12 : vector<16x128xf32>
    %c0_8 = arith.constant 0 : index
    %c0_9 = arith.constant 0 : index
    %14 = vector.load %arg4[%c0_8, %c0_9] : memref<128x128xf32, #tpu.memory_space<vmem>>, vector<128x128xf32>
    %cst_10 = arith.constant dense<0.000000e+00> : vector<16x128xf32>
    %15 = tpu.matmul %13, %14, %cst_10 {dimension_numbers = #tpu.dot_dimension_numbers<[1], [0], [0], [1], [0, 0, 1, 1], [], []>} : vector<16x128xf32>, vector<128x128xf32>, vector<16x128xf32> -> vector<16x128xf32>
    %c0_11 = arith.constant 0 : index
    %c0_12 = arith.constant 0 : index
    %16 = vector.load %arg5[%c0_11, %c0_12] : memref<1x128xf32, #tpu.memory_space<vmem>>, vector<1x128xf32>
    %17 = vector.broadcast %16 : vector<1x128xf32> to vector<16x128xf32>
    %18 = arith.addf %15, %17 : vector<16x128xf32>
    %c0_13 = arith.constant 0 : index
    %c0_14 = arith.constant 0 : index
    %19 = vector.load %arg6[%c0_13, %c0_14] : memref<16x128xf32, #tpu.memory_space<vmem>>, vector<16x128xf32>
    tpu.vector_store %arg6[%c0_13, %c0_14], %18 {strides = array<i32>} : memref<16x128xf32, #tpu.memory_space<vmem>>, vector<16x128xf32>,
    return
  }
  func.func @transform_0(%arg0: i32) -> (i32, i32) {
    %c0_i32 = arith.constant 0 : i32
    %c0_i32_0 = arith.constant 0 : i32
    return %arg0, %c0_i32 : i32, i32
  }
  func.func @transform_1(%arg0: i32) -> (i32, i32) {
    %c0_i32 = arith.constant 0 : i32
    %c0_i32_0 = arith.constant 0 : i32
    %c0_i32_1 = arith.constant 0 : i32
    return %c0_i32, %c0_i32_0 : i32, i32
  }
  func.func @transform_2(%arg0: i32) -> (i32, i32) {
    %c0_i32 = arith.constant 0 : i32
    %c0_i32_0 = arith.constant 0 : i32
    %c0_i32_1 = arith.constant 0 : i32
    return %c0_i32, %c0_i32_0 : i32, i32
  }
  func.func @transform_3(%arg0: i32) -> (i32, i32) {
    %c0_i32 = arith.constant 0 : i32
    %c0_i32_0 = arith.constant 0 : i32
    %c0_i32_1 = arith.constant 0 : i32
    return %c0_i32, %c0_i32_0 : i32, i32
  }
  func.func @transform_4(%arg0: i32) -> (i32, i32) {
    %c0_i32 = arith.constant 0 : i32
    %c0_i32_0 = arith.constant 0 : i32
    %c0_i32_1 = arith.constant 0 : i32
    return %c0_i32, %c0_i32_0 : i32, i32
  }
  func.func @transform_5(%arg0: i32) -> (i32, i32) {
    %c0_i32 = arith.constant 0 : i32
    %c0_i32_0 = arith.constant 0 : i32
    return %arg0, %c0_i32 : i32, i32
  }
}

</mosaic_0001>

<bundles_post_ra>
// kernel: tpu_custom_call.1
= control target key start
LH: loop header
LB: loop body
LE: loop exit
PB: predicated region body
PF: predicated region fallthrough
CT: control target
= control target key end

     0   :  { %6 = vsyncpa [#allocation3], 0  ;;  %s440_s0 = inlined_call_operand.hbm [shape: f32[8,128], index: 0, kind: input, shape index: {}]   ;;  %s441_s1 = inlined_call_operand.hbm [shape: f32[16,128], index: 1, kind: output, shape index: {}]  }
   0x1   :  { %7 = vsyncpa [#allocation4], 0 }
   0x2   :  { %9 = vsyncpa [#allocation4 + $0x1], 0  ;;  %s356_s6 = smov 0   ;;  %s358_s7 = smov 0  }
   0x3   :  { %s360_s8 = smov 0   ;;  %s362_s9 = smov 0  }
   0x4 LB: > { %s377_s10 = sadd.s32 4294967295, %s343_s9   ;;  %s187_s11 = sadd.s32 4294967294, %s343_s9   ;;  %s343_s9 = sphi %s362_s9, %s447_s9   ;;  %s339_s8 = sphi %s360_s8, %s446_s8   ;;  %s335_s7 = sphi %s358_s7, %s445_s7   ;;  %s331_s6 = sphi %s356_s6, %s444_s6  }
   0x5   : > { %s381_s12 = sadd.s32 1, %s343_s9   ;;  %s43_s13 = sadd.s32 1, %s339_s8 }
   0x6   : > { %s40_s14 = ssub.s32 %s343_s9, %s381_s12  ;;  %p53_p0 = scmp.ne.s32.totalorder %s339_s8, %s335_s7 }
   0x7   : > { %p41_p1 = scmp.eq.s32.totalorder %s40_s14, 0  ;;  %p54_p2 = scmp.eq.s32.totalorder %s377_s10, 1 }
   0x8   : > { %p59_p3 = scmp.ne.s32.totalorder %s335_s7, %s331_s6  ;;  %p60_p4 = scmp.eq.s32.totalorder %s187_s11, 1 }
   0x9   : > { %s392_s15 = scalar_select %p41_p1, %s339_s8, %s43_s13  }
   0xa   : > { %p394_p5 = por %p54_p2, %p53_p0  ;;  %p398_p6 = por %p60_p4, %p59_p3 }
   0xb   : > { %p188_p7 = scmp.ge.s32.totalorder %s343_s9, 1  ;;  %p67_p8 = scmp.lt.s32.totalorder %s343_s9, 3 }
   0xc   : > { %p211_p9 = scmp.eq.s32.totalorder %s377_s10, 0  ;;  %s79_s20 = sshll.u32 %s440_s0, 4  ;;  %s80_s20 = int_to_ptr.hbm [resolvable:$true] %s79_s20 }
   0xd   : > { %p68_p10 = pnand %p188_p7, %p67_p8  ;;  %s345_s21 = smov [#allocation2]  }
   0xe   : > { %s81_s22 = sshll.u32 %s345_s21, 4  ;;  %s82_s22 = int_to_ptr.vmem [resolvable:$true] %s81_s22 }
   0xf   : > { %p203_p11 = pneg %p68_p10  ;;  %94 = sbr.rel (%p68_p10) target bundleno = 37 (0x25), region = 24 }
  0x11   : > { %p204_p12 = pnand %p211_p9, %p203_p11 }
  0x13   : > { %206 = dma.hbm_to_vmem [thread:$0]  (!%p204_p12), %s80_s20, 128, %s82_s22, [#allocation3]  }
  0x14   : > { %322 = dma.done.wait (%p211_p9), [#allocation3], 128  }
  0x15   : > { %324 = vsyncadd (%p211_p9), [#allocation3], 4294967168  ;;  %s107_s23 = sand.u32 1, %s335_s7   ;;  %s194_s24 = sshll.u32 %s377_s10, 3  ;;  %v110_v0 = vld [vmem:[#allocation2] sm:$0xff] }
  0x16   : > { %s192_s25 = sshll.u32 %s107_s23, 3  ;;  %s123_s28 = scalar_lea.hbm %s441_s1, %s194_s24 }
  0x17   : > { %s109_s29 = scalar_lea.vmem [#allocation5], %s192_s25  ;;  %s127_s2 = sshll.u32 %s123_s28, 4  ;;  %s128_s2 = int_to_ptr.hbm [resolvable:$true] %s127_s2 }
  0x18   : > { %s125_s30 = sshll.u32 %s109_s29, 4  ;;  %111 = vst [vmem:[%s109_s29] sm:$0xff] %v110_v0  ;;  %s113_s3 = scalar_lea.sflag [#allocation4], %s107_s23  ;;  %s126_s30 = int_to_ptr.vmem [resolvable:$true] %s125_s30 }
  0x19   : > { %s291_s4 = sshra.s32 %s128_s2, 4  ;;  %s297_s13 = scalar_lea.hbm %s441_s1, 16  ;;  %s292_s4 = int_to_ptr.hbm [resolvable:$true] %s291_s4 }
  0x1a   : > { %s293_s5 = scalar_lea.hbm %s292_s4, 8  ;;  %p298_p2 = scmp.lt.s32.totalorder %s292_s4, %s441_s1 }
  0x1b   : > { %p294_p13 = scmp.ne.s32.totalorder %s292_s4, %s293_s5  ;;  %p299_p3 = scmp.lt.s32.totalorder %s297_s13, %s293_s5 }
  0x1d   : > { %p295_p0 = pnand %p294_p13, %p394_p5  ;;  %p300_p4 = por %p299_p3, %p298_p2 }
  0x1f   : > { %p296_p1 = pneg %p295_p0 }
  0x21   : > { %p301_p7 = pnand %p300_p4, %p296_p1 }
  0x23   : > { %304 = shalt.err (!%p301_p7)
}
  0x24   : > { %201 = dma.vmem_to_hbm [thread:$0]  (%p394_p5), %s126_s30, 128, %s128_s2, %s113_s3  }
  0x25 PF: > { %p213_p8 = scmp.ge.s32.totalorder %s343_s9, 2  ;;  %s139_s19 = sand.u32 1, %s331_s6  }
  0x26   : > { %s140_s20 = scalar_lea.sflag [#allocation4], %s139_s19 }
  0x27   : > { %p208_p9 = pnand %p213_p8, %p398_p6 }
  0x29   : > { %p209_p10 = pneg %p208_p9 }
  0x2b   : > { %326 = dma.done.wait (%p209_p10), %s140_s20, 128  }
  0x2c   : > { %328 = vsyncadd (%p209_p10), %s140_s20, 4294967168  ;;  %p12_p11 = scmp.ge.s32.totalorder %s381_s12, 4   ;;  %s444_s6 = smov %s335_s7 }
  0x2d   : > { %s445_s7 = smov %s339_s8  ;;  %s446_s8 = smov %s392_s15 }
  0x2e   : > { %s447_s9 = smov %s381_s12  ;;  %14 = sbr.rel (!%p12_p11) target bundleno = 4 (0x4), region = 61 }
  0x33   :  { %146 = vsyncpa [#allocation3], 1 }
  0x34   :  { %148 = vsyncpa [#allocation3 + $0x1], 1 }
  0x35   :  { %149 = vsyncpa [#allocation4], 1 }
  0x36   :  { %151 = vsyncpa [#allocation4 + $0x1], 1 }

// kernel: tpu_custom_call.1
= control target key start
LH: loop header
LB: loop body
LE: loop exit
PB: predicated region body
PF: predicated region fallthrough
CT: control target
= control target key end

     0   :  { %10 = vsyncpa [#allocation3], 0  ;;  %s491_s0 = inlined_call_operand.hbm [shape: f32[16,32], index: 0, kind: input, shape index: {}]   ;;  %s492_s1 = inlined_call_operand.hbm [shape: f32[32,128], index: 1, kind: input, shape index: {}]   ;;  %s493_s2 = inlined_call_operand.vmem [shape: f32[1,128], index: 2, kind: input, shape index: {}]   ;;  %s494_s3 = inlined_call_operand.hbm [shape: f32[128,128], index: 3, kind: input, shape index: {}]   ;;  %s495_s4 = inlined_call_operand.vmem [shape: f32[1,128], index: 4, kind: input, shape index: {}]   ;;  %s496_s5 = inlined_call_operand.hbm [shape: f32[16,128], index: 5, kind: output, shape index: {}]  }
   0x1   :  { %11 = vsyncpa [#allocation6], 0 }
   0x2   :  { %12 = vsyncpa [#allocation4], 0  ;;  %s30_s20 = sshll.u32 %s492_s1, 4  ;;  %s395_s21 = smov [#allocation5]   ;;  %s31_s20 = int_to_ptr.hbm [resolvable:$true] %s30_s20 }
   0x3   :  { %s32_s22 = sshll.u32 %s395_s21, 4  ;;  %s17_s25 = sshll.u32 %s491_s0, 4  ;;  %s33_s22 = int_to_ptr.vmem [resolvable:$true] %s32_s22  ;;  %s18_s25 = int_to_ptr.hbm [resolvable:$true] %s17_s25 }
   0x4   :  { %s396_s26 = smov 128   ;;  %s397_s27 = smov 8  }
   0x5   :  { %38 = dma.hbm_to_vmem [thread:$0]  %s31_s20, 512, %s33_s22, [#allocation6], %s396_s26, %s396_s26, %s397_s27  }
   0x6   :  { %s398_s28 = smov [#allocation2]   ;;  %s45_s1 = sshll.u32 %s494_s3, 4  ;;  %s46_s1 = int_to_ptr.hbm [resolvable:$true] %s45_s1 }
   0x7   :  { %s19_s29 = sshll.u32 %s398_s28, 4  ;;  %s399_s0 = smov [#allocation7]   ;;  %s20_s29 = int_to_ptr.vmem [resolvable:$true] %s19_s29 }
   0x8   :  { %25 = dma.hbm_to_vmem [thread:$0]  %s18_s25, 256, %s20_s29, [#allocation3], %s396_s26, %s396_s26, %s397_s27  }
   0x9   :  { %s47_s7 = sshll.u32 %s399_s0, 4  ;;  %s48_s7 = int_to_ptr.vmem [resolvable:$true] %s47_s7 }
   0xa   :  { %53 = dma.hbm_to_vmem [thread:$0]  %s46_s1, 2048, %s48_s7, [#allocation6], %s396_s26, %s396_s26, %s397_s27  }
   0xb   :  { %389 = dma.done.wait [#allocation3], 256  }
   0xc   :  { %390 = vsyncadd [#allocation3], 4294967040 }
   0xd   :  { %391 = dma.done.wait [#allocation6], 2560  }
   0xe   :  { %392 = vsyncadd [#allocation6], 4294964736  ;;  %v73_v0 = vld [vmem:[#allocation5 + $0x18] sm:$0xff]  ;;  %v72_v1 = vld [vmem:[#allocation5 + $0x10] sm:$0xff]  ;;  %vm78_vm0 = vcmask 261120   ;;  %s400_s10 = smov [#allocation8]  }
   0xf   :  { %97 = vmatpush.msra.mxu0 %v73_v0  ;;  %v71_v2 = vld [vmem:[#allocation5 + $0x8] sm:$0xff]  ;;  %v70_v3 = vld [vmem:[#allocation5] sm:$0xff]  ;;  %v68_v4 = vld [vmem:[#allocation2] sm:$0xff]  ;;  %s245_s11 = sshll.u32 %s400_s10, 4  ;;  %s247_s14 = sshll.u32 %s496_s5, 4  ;;  %s246_s11 = int_to_ptr.vmem [resolvable:$true] %s245_s11  ;;  %s248_s14 = int_to_ptr.hbm [resolvable:$true] %s247_s14 }
  0x10   :  { %v69_v5 = vld [vmem:[#allocation2 + $0x8] sm:$0xff]  ;;  %v210_v7 = vld [vmem:[#allocation7 + $0x70] sm:$0xff]  ;;  %v209_v8 = vld [vmem:[#allocation7 + $0x68] sm:$0xff] }
  0x11   :  { %98 = vmatpush.msra.mxu0 %v72_v1  ;;  %v211_v6 = vld [vmem:[#allocation7 + $0x78] sm:$0xff]  ;;  %v208_v9 = vld [vmem:[#allocation7 + $0x60] sm:$0xff]  ;;  %v287_v10 = vld [vmem:[%s493_s2] ss:$0 sm:$0xff] }
  0x12   :  { %216 = vmatpush.msra.mxu1 %v211_v6  ;;  %265 = vmatpush.msra.mxu2 %v211_v6  ;;  %v207_v11 = vld [vmem:[#allocation7 + $0x58] sm:$0xff]  ;;  %v206_v13 = vld [vmem:[#allocation7 + $0x50] sm:$0xff]  ;;  %v205_v15 = vld [vmem:[#allocation7 + $0x48] sm:$0xff] }
  0x13   :  { %99 = vmatpush.msra.mxu0 %v71_v2  ;;  %v204_v17 = vld [vmem:[#allocation7 + $0x40] sm:$0xff]  ;;  %v203_v19 = vld [vmem:[#allocation7 + $0x38] sm:$0xff]  ;;  %v202_v20 = vld [vmem:[#allocation7 + $0x30] sm:$0xff] }
  0x14   :  { %217 = vmatpush.msra.mxu1 %v210_v7  ;;  %266 = vmatpush.msra.mxu2 %v210_v7  ;;  %v201_v23 = vld [vmem:[#allocation7 + $0x28] sm:$0xff]  ;;  %v200_v27 = vld [vmem:[#allocation7 + $0x20] sm:$0xff]  ;;  %v199_v30 = vld [vmem:[#allocation7 + $0x18] sm:$0xff] }
  0x15   :  { %100 = vmatpush.msra.mxu0 %v70_v3  ;;  %v198_v34 = vld [vmem:[#allocation7 + $0x10] sm:$0xff]  ;;  %v197_v37 = vld [vmem:[#allocation7 + $0x8] sm:$0xff]  ;;  %v196_v42 = vld [vmem:[#allocation7] sm:$0xff] }
  0x16   :  { %261 = vmatmul.msk.f32.vlgmr.msra.gmra.mxu0 %vm78_vm0, %v68_v4  ;;  %218 = vmatpush.msra.mxu1 %v209_v8 }
  0x17   :  { %267 = vmatpush.msra.mxu2 %v209_v8 }
  0x18   :  { %219 = vmatpush.msra.mxu1 %v208_v9 }
  0x19   :  { %268 = vmatpush.msra.mxu2 %v208_v9 }
  0x1a   :  { %220 = vmatpush.msra.mxu1 %v207_v11 }
  0x1b   :  { %269 = vmatpush.msra.mxu2 %v207_v11 }
  0x1c   :  { %221 = vmatpush.msra.mxu1 %v206_v13 }
  0x1d   :  { %270 = vmatpush.msra.mxu2 %v206_v13 }
  0x1e   :  { %262 = vmatmul.msk.f32.gmra.mxu0 %vm78_vm0, %v69_v5  ;;  %222 = vmatpush.msra.mxu1 %v205_v15 }
  0x1f   :  { %271 = vmatpush.msra.mxu2 %v205_v15 }
  0x20   :  { %223 = vmatpush.msra.mxu1 %v204_v17 }
  0x21   :  { %272 = vmatpush.msra.mxu2 %v204_v17 }
  0x22   :  { %224 = vmatpush.msra.mxu1 %v203_v19 }
  0x23   :  { %273 = vmatpush.msra.mxu2 %v203_v19 }
  0x24   :  { %225 = vmatpush.msra.mxu1 %v202_v20 }
  0x25   :  { %274 = vmatpush.msra.mxu2 %v202_v20 }
  0x26   :  { %226 = vmatpush.msra.mxu1 %v201_v23 }
  0x27   :  { %275 = vmatpush.msra.mxu2 %v201_v23 }
  0x28   :  { %227 = vmatpush.msra.mxu1 %v200_v27 }
  0x29   :  { %276 = vmatpush.msra.mxu2 %v200_v27 }
  0x2a   :  { %228 = vmatpush.msra.mxu1 %v199_v30 }
  0x2b   :  { %277 = vmatpush.msra.mxu2 %v199_v30 }
  0x2c   :  { %229 = vmatpush.msra.mxu1 %v198_v34 }
  0x2d   :  { %278 = vmatpush.msra.mxu2 %v198_v34 }
  0x2e   :  { %230 = vmatpush.msra.mxu1 %v197_v37 }
  0x2f   :  { %279 = vmatpush.msra.mxu2 %v197_v37 }
  0x30   :  { %231 = vmatpush.msra.mxu1 %v196_v42 }
  0x31   :  { %280 = vmatpush.msra.mxu2 %v196_v42 }
  0x93   :  { %v102_v12 = vpop.f32.mrf.mxu0 }
  0x94   :  { %v452_v14 = vadd.f32 %v287_v10, %v102_v12 }
  0x96   :  { %v455_v16 = vmul.f32 0.70710677, %v452_v14 }
  0x98   :  { %v112_v18 = vmul.f32 %v455_v16, %v455_v16 }
  0x9a   :  { %v459_v21 = vmin.f32 %v112_v18, 16.0 }
  0x9b   :  { %v105_v22 = vpop.f32.mrf.mxu0 }
  0x9c   :  { %v114_v24 = vmul.f32 2.1237322e-06, %v459_v21  ;;  %v462_v25 = vadd.f32 %v287_v10, %v105_v22  ;;  %v125_v26 = vmul.f32 3.8918573e-05, %v459_v21 }
  0x9e   :  { %v115_v28 = vadd.f32 0.00028619796, %v114_v24  ;;  %v466_v29 = vmul.f32 0.70710677, %v462_v25  ;;  %v126_v31 = vadd.f32 0.001143296, %v125_v26 }
  0xa0   :  { %v116_v32 = vmul.f32 %v115_v28, %v459_v21  ;;  %v152_v33 = vmul.f32 %v466_v29, %v466_v29  ;;  %v127_v35 = vmul.f32 %v126_v31, %v459_v21 }
  0xa2   :  { %v153_v36 = vmin.f32 %v152_v33, 16.0  ;;  %v128_v38 = vadd.f32 0.014752088, %v127_v35  ;;  %v117_v39 = vadd.f32 0.0036580483, %v116_v32  ;;  %v108_v33 = vmul.f32 0.5, %v452_v14 }
  0xa3   :  { %v288_v14 = vld [vmem:[%s495_s4] ss:$0 sm:$0xff] }
  0xa4   :  { %v154_v40 = vmul.f32 2.1237322e-06, %v153_v36  ;;  %v165_v41 = vmul.f32 3.8918573e-05, %v153_v36  ;;  %v129_v43 = vmul.f32 %v128_v38, %v459_v21  ;;  %v118_v47 = vmul.f32 %v117_v39, %v459_v21 }
  0xa6   :  { %v155_v44 = vadd.f32 0.00028619796, %v154_v40  ;;  %v166_v45 = vadd.f32 0.001143296, %v165_v41  ;;  %v130_v46 = vadd.f32 0.112945676, %v129_v43 }
  0xa7   :  { %v119_v54 = vadd.f32 0.05243302, %v118_v47  ;;  %v109_v41 = vmul.f32 0.5, %v462_v25 }
  0xa8   :  { %v156_v48 = vmul.f32 %v155_v44, %v153_v36  ;;  %v167_v49 = vmul.f32 %v166_v45, %v153_v36  ;;  %v131_v50 = vmul.f32 %v130_v46, %v459_v21 }
  0xa9   :  { %v120_v60 = vmul.f32 %v119_v54, %v459_v21 }
  0xaa   :  { %v168_v51 = vadd.f32 0.014752088, %v167_v49  ;;  %v157_v52 = vadd.f32 0.0036580483, %v156_v48  ;;  %v132_v53 = vadd.f32 0.4994258, %v131_v50 }
  0xab   :  { %v121_v0 = vadd.f32 0.18741608, %v120_v60 }
  0xac   :  { %v169_v55 = vmul.f32 %v168_v51, %v153_v36  ;;  %v133_v56 = vmul.f32 %v132_v53, %v459_v21  ;;  %v158_v58 = vmul.f32 %v157_v52, %v153_v36 }
  0xad   :  { %v122_v5 = vmul.f32 %v121_v0, %v459_v21 }
  0xae   :  { %v170_v57 = vadd.f32 0.112945676, %v169_v55  ;;  %v134_v59 = vadd.f32 1.0, %v133_v56  ;;  %v159_v63 = vadd.f32 0.05243302, %v158_v58 }
  0xaf   :  { %v123_v10 = vadd.f32 1.1283791, %v122_v5 }
  0xb0   :  { %v171_v61 = vmul.f32 %v170_v57, %v153_v36  ;;  %289 = vrcp.f32 %v134_v59  ;;  %v160_v4 = vmul.f32 %v159_v63, %v153_v36  ;;  %v146_v9 = vand.u32 2147483648, %v134_v59 }
  0xb1   :  { %v144_v12 = vand.u32 2147483647, %v134_v59  ;;  %vm140_vm2 = vweird.f32 %v134_v59  ;;  %v124_v20 = vmul.f32 %v123_v10, %v455_v16 }
  0xb2   :  { %v172_v62 = vadd.f32 0.4994258, %v171_v61  ;;  %v161_v8 = vadd.f32 0.18741608, %v160_v4  ;;  %v147_v18 = vor.u32 1.1754944e-38, %v146_v9 }
  0xb3   :  { %vm145_vm4 = vcmp.eq.f32.partialorder %v144_v12, 8.507059e+37 }
  0xb4   :  { %v173_v1 = vmul.f32 %v172_v62, %v153_v36  ;;  %v162_v17 = vmul.f32 %v161_v8, %v153_v36 }
  0xb6   :  { %v174_v2 = vadd.f32 1.0, %v173_v1  ;;  %v290_v3 = vpop.eup %289  ;;  %v163_v27 = vadd.f32 1.1283791, %v162_v17 }
  0xb7   :  { %v136_v6 = vmul.f32 %v290_v3, %v134_v59  ;;  %vm141_vm1 = vweird.f32 %v290_v3 }
  0xb8   :  { %291 = vrcp.f32 %v174_v2  ;;  %vm142_vm3 = vmor %vm140_vm2, %vm141_vm1  ;;  %v186_v26 = vand.u32 2147483648, %v174_v2  ;;  %v184_v30 = vand.u32 2147483647, %v174_v2  ;;  %vm180_vm6 = vweird.f32 %v174_v2 }
  0xb9   :  { %v137_v7 = vsub.f32 1.0, %v136_v6  ;;  %v164_v16 = vmul.f32 %v163_v27, %v466_v29 }
  0xba   :  { %v187_v35 = vor.u32 1.1754944e-38, %v186_v26  ;;  %vm185_vm8 = vcmp.eq.f32.partialorder %v184_v30, 8.507059e+37 }
  0xbb   :  { %v138_v11 = vmul.f32 %v290_v3, %v137_v7 }
  0xbd   :  { %v139_v15 = vadd.f32 %v290_v3, %v138_v11 }
  0xbe   :  { %v292_v13 = vpop.eup %291 }
  0xbf   :  { %v176_v19 = vmul.f32 %v292_v13, %v174_v2  ;;  %v143_v22 = vsel %vm142_vm3, %v290_v3, %v139_v15  ;;  %vm181_vm5 = vweird.f32 %v292_v13 }
  0xc0   :  { %v148_v21 = vsel %vm145_vm4, %v147_v18, %v143_v22  ;;  %vm182_vm7 = vmor %vm180_vm6, %vm181_vm5 }
  0xc1   :  { %v177_v23 = vsub.f32 1.0, %v176_v19  ;;  %v149_v24 = vmul.f32 %v148_v21, %v124_v20 }
  0xc3   :  { %v178_v28 = vmul.f32 %v292_v13, %v177_v23  ;;  %v263_v31 = vclamps-f32 %v149_v24, 1.0 }
  0xc5   :  { %v179_v32 = vadd.f32 %v292_v13, %v178_v28  ;;  %v192_v34 = vadd.f32 1.0, %v263_v31 }
  0xc7   :  { %v183_v36 = vsel %vm182_vm7, %v292_v13, %v179_v32  ;;  %v194_v37 = vmul.f32 %v192_v34, %v108_v33 }
  0xc8   :  { %v188_v38 = vsel %vm185_vm8, %v187_v35, %v183_v36 }
  0xc9   :  { %v189_v39 = vmul.f32 %v188_v38, %v164_v16  ;;  %232 = vmatmul.f32.vlgmr.msra.gmra.mxu1 %v194_v37 }
  0xcb   :  { %v264_v40 = vclamps-f32 %v189_v39, 1.0 }
  0xcd   :  { %v193_v42 = vadd.f32 1.0, %v264_v40 }
  0xcf   :  { %v195_v43 = vmul.f32 %v193_v42, %v109_v41 }
  0xd1   :  { %235 = vmatmul.f32.vlgmr.msra.gmra.mxu2 %v195_v43 }
 0x146   :  { %v233_v44 = vpop.f32.mrf.mxu1 }
 0x147   :  { %v234_v45 = vadd.f32 %v288_v14, %v233_v44 }
 0x149   :  { %239 = vst [vmem:[#allocation8] sm:$0xff] %v234_v45 }
 0x154   :  { %v236_v29 = vpop.f32.mrf.mxu2 }
 0x155   :  { %v237_v46 = vadd.f32 %v288_v14, %v236_v29 }
 0x157   :  { %240 = vst [vmem:[#allocation8 + $0x8] sm:$0xff] %v237_v46 }
 0x158   :  { %253 = dma.vmem_to_hbm [thread:$0]  %s246_s11, 256, %s248_s14, [#allocation4], %s396_s26, %s396_s26, %s397_s27  }
 0x159   :  { %393 = dma.done.wait [#allocation4], 256  }
 0x15a   :  { %394 = vsyncadd [#allocation4], 4294967040 }
 0x15b   :  { %258 = vsyncpa [#allocation3], 1 }
 0x15c   :  { %259 = vsyncpa [#allocation6], 1 }
 0x15d   :  { %260 = vsyncpa [#allocation4], 1 }

</bundles_post_ra>
